<compile_context>
chip_gen: v6e
topology: v6e:2x2x1
jax: 0.10.0
libtpu: 0.0.40
codegen_flags: <defaults>
</compile_context>

<pallas_src>
import functools
import math

import jax
import jax.numpy as jnp
from jax.experimental import pallas as pl
from jax.experimental.pallas import tpu as pltpu

SUBLANE = 8


def _round_up(v, m):
    return ((v + m - 1) // m) * m


def _fused_mlp_kernel(*refs, num_layers, matmul_dtype):
    """One batch tile: h = x; for each layer h = act(h @ W + b); write o.

    refs = (x_ref, w1, b1, w2, b2, ..., wL, bL, o_ref).  All feature dims are
    the real (unpadded) sizes; Mosaic pads them to vreg tiles inside VMEM.
    Matmul operands are cast to `matmul_dtype` (bf16 or f32); accumulation,
    bias add and tanh stay in f32.
    """
    x_ref = refs[0]
    o_ref = refs[-1]
    h = x_ref[...]                                   # (tm, d0) f32
    for i in range(num_layers):
        w = refs[1 + 2 * i][...]                     # (din_i, dout_i) f32
        b = refs[2 + 2 * i][...]                     # (1, dout_i) f32
        h = jnp.dot(h.astype(matmul_dtype), w.astype(matmul_dtype),
                    preferred_element_type=jnp.float32) + b
        if i < num_layers - 1:
            h = jnp.tanh(h)                          # EUP, f32
    o_ref[...] = h.astype(o_ref.dtype)


def init_mlp_params(layers, key):
    """Xavier-normal weights (matching nn.init.xavier_normal_), zero biases.

    Weights are stored pre-transposed as (in, out) so the kernel computes
    x @ W directly — identical math to PyTorch's x @ W^T + b.
    """
    params = []
    for i in range(len(layers) - 1):
        fan_in, fan_out = layers[i], layers[i + 1]
        key, sub = jax.random.split(key)
        std = math.sqrt(2.0 / (fan_in + fan_out))
        w = (std * jax.random.normal(sub, (fan_in, fan_out))).astype(jnp.float32)
        b = jnp.zeros((fan_out,), dtype=jnp.float32)
        params.append((w, b))
    return params


def mlp_forward(x, params, *, tm=2048, use_bf16=True):
    """Fused MLP forward.  x: (N, d0) f32 -> (N, d_last) f32."""
    n, d0 = x.shape
    num_layers = len(params)
    dims = [d0] + [w.shape[1] for (w, _) in params]

    # Pad the batch only to a multiple of 8 sublanes with zero rows (<= 7).
    n_pad = _round_up(n, SUBLANE)
    if n_pad != n:
        x = jnp.pad(x, ((0, n_pad - n), (0, 0)))

    # Batch tile: multiple of 8; capped so the grid has >= 2 steps whenever
    # possible (feeds both v7x TensorCores via the "parallel" axis).  Last
    # grid block may be ragged; rows are independent, so the garbage rows it
    # reads past n_pad never contaminate real rows and their writes are
    # dropped.
    tm_eff = max(SUBLANE, min(tm, _round_up(pl.cdiv(n_pad, 2), SUBLANE)))
    grid = (pl.cdiv(n_pad, tm_eff),)

    # Real shapes, no HBM padding: every weight/bias block covers the full
    # array (legal since block dims == array dims) and stays VMEM-resident
    # across the grid via constant index maps.
    in_specs = [pl.BlockSpec((tm_eff, d0), lambda i: (i, 0))]    # streamed tile
    flat_inputs = [x]
    for w, b in params:
        in_specs.append(pl.BlockSpec(w.shape, lambda i: (0, 0)))
        in_specs.append(pl.BlockSpec((1, b.shape[0]), lambda i: (0, 0)))
        flat_inputs.extend([w, b.reshape(1, -1)])
    out_specs = pl.BlockSpec((tm_eff, dims[-1]), lambda i: (i, 0))

    # Honest cost estimate from real dims.
    flops = sum(2 * n_pad * dims[i] * dims[i + 1] for i in range(num_layers))
    transcendentals = sum(n_pad * dims[i + 1] for i in range(num_layers - 1))
    bytes_accessed = 4 * (
        n_pad * d0
        + sum(w.size + b.size for w, b in params)
        + n_pad * dims[-1]
    )

    matmul_dtype = jnp.bfloat16 if use_bf16 else jnp.float32
    kernel = functools.partial(
        _fused_mlp_kernel, num_layers=num_layers, matmul_dtype=matmul_dtype)

    out = pl.pallas_call(
        kernel,
        out_shape=jax.ShapeDtypeStruct((n_pad, dims[-1]), jnp.float32),
        grid=grid,
        in_specs=in_specs,
        out_specs=out_specs,
        compiler_params=pltpu.CompilerParams(
            dimension_semantics=("parallel",),   # megacore-split on v7x
        ),
        cost_estimate=pl.CostEstimate(
            flops=flops,
            transcendentals=transcendentals,
            bytes_accessed=bytes_accessed,
        ),
    )(*flat_inputs)

    return out if n_pad == n else out[:n]


def _reference_forward(x, params):
    """Plain-JAX reference (same params, same math as the PyTorch module)."""
    h = x
    for i, (w, b) in enumerate(params):
        h = h @ w + b
        if i < len(params) - 1:
            h = jnp.tanh(h)
    return h


if __name__ == "__main__":
    # Small shapes consistent with an IPMNN-style MLP: input dim 4, two hidden
    # layers of width 32, output dim 2.
    layers = [4, 32, 32, 2]

    key = jax.random.PRNGKey(0)
    kx1, kx2, kx3, kp = jax.random.split(key, 4)
    params = init_mlp_params(layers, kp)

    fwd = jax.jit(mlp_forward, static_argnames=("tm", "use_bf16"))

    # Case 1: tiny batch, exact f32 matmuls, single grid step.
    x1 = jax.random.normal(kx1, (8, layers[0]), dtype=jnp.float32)
    y1 = jax.block_until_ready(fwd(x1, params, use_bf16=False))
    assert y1.shape == (8, layers[-1])
    assert jnp.allclose(y1, _reference_forward(x1, params), atol=1e-5, rtol=1e-5)

    # Case 2: larger batch, multi-step parallel grid.
    x2 = jax.random.normal(kx2, (1024, layers[0]), dtype=jnp.float32)
    ref2 = _reference_forward(x2, params)
    #   2a: default bf16-matmul path (f32 accumulation) — loose tolerance.
    y2 = jax.block_until_ready(fwd(x2, params))
    assert y2.shape == (1024, layers[-1])
    assert jnp.allclose(y2, ref2, atol=5e-2, rtol=5e-2)
    #   2b: exact f32 path — tight tolerance.
    y2f = jax.block_until_ready(fwd(x2, params, use_bf16=False))
    assert jnp.allclose(y2f, ref2, atol=1e-5, rtol=1e-5)

    # Case 3: batch not divisible by the tile — exercises the ragged last
    # grid block (pl.cdiv grid) with the exact f32 path.
    x3 = jax.random.normal(kx3, (1000, layers[0]), dtype=jnp.float32)
    y3 = jax.block_until_ready(fwd(x3, params, use_bf16=False))
    assert y3.shape == (1000, layers[-1])
    assert jnp.allclose(y3, _reference_forward(x3, params), atol=1e-5, rtol=1e-5)

    print("KERNEL_OK")
</pallas_src>

<mosaic_0001>
module attributes {stable_mosaic.version = 11 : i64} {
  func.func @_fused_mlp_kernel(%arg0: i32, %arg1: memref<8x4xf32, #tpu.memory_space<vmem>>, %arg2: memref<4x32xf32, #tpu.memory_space<vmem>>, %arg3: memref<1x32xf32, #tpu.memory_space<vmem>>, %arg4: memref<32x32xf32, #tpu.memory_space<vmem>>, %arg5: memref<1x32xf32, #tpu.memory_space<vmem>>, %arg6: memref<32x2xf32, #tpu.memory_space<vmem>>, %arg7: memref<1x2xf32, #tpu.memory_space<vmem>>, %arg8: memref<8x2xf32, #tpu.memory_space<vmem>>) attributes {dimension_semantics = [#tpu.dimension_semantics<parallel>], iteration_bounds = array<i64: 1>, scalar_prefetch = 0 : i64, scratch_operands = 0 : i64, tpu.core_type = #tpu.core_type<tc>, window_params = [{transform_indices = @transform_0, window_bounds = array<i64: 8, 4>}, {pipeline_mode = #tpu.pipeline_mode<synchronous>, transform_indices = @transform_1, window_bounds = array<i64: 4, 32>}, {pipeline_mode = #tpu.pipeline_mode<synchronous>, transform_indices = @transform_2, window_bounds = array<i64: 1, 32>}, {pipeline_mode = #tpu.pipeline_mode<synchronous>, transform_indices = @transform_3, window_bounds = array<i64: 32, 32>}, {pipeline_mode = #tpu.pipeline_mode<synchronous>, transform_indices = @transform_4, window_bounds = array<i64: 1, 32>}, {pipeline_mode = #tpu.pipeline_mode<synchronous>, transform_indices = @transform_5, window_bounds = array<i64: 32, 2>}, {pipeline_mode = #tpu.pipeline_mode<synchronous>, transform_indices = @transform_6, window_bounds = array<i64: 1, 2>}, {transform_indices = @transform_7, window_bounds = array<i64: 8, 2>}]} {
    %c0 = arith.constant 0 : index
    %c0_0 = arith.constant 0 : index
    %0 = vector.load %arg1[%c0, %c0_0] : memref<8x4xf32, #tpu.memory_space<vmem>>, vector<8x4xf32>
    %c0_1 = arith.constant 0 : index
    %c0_2 = arith.constant 0 : index
    %1 = vector.load %arg2[%c0_1, %c0_2] : memref<4x32xf32, #tpu.memory_space<vmem>>, vector<4x32xf32>
    %c0_3 = arith.constant 0 : index
    %c0_4 = arith.constant 0 : index
    %2 = vector.load %arg3[%c0_3, %c0_4] : memref<1x32xf32, #tpu.memory_space<vmem>>, vector<1x32xf32>
    %cst = arith.constant dense<0.000000e+00> : vector<8x32xf32>
    %3 = tpu.matmul %0, %1, %cst {dimension_numbers = #tpu.dot_dimension_numbers<[1], [0], [0], [1], [0, 0, 1, 1], [], []>} : vector<8x4xf32>, vector<4x32xf32>, vector<8x32xf32> -> vector<8x32xf32>
    %4 = vector.broadcast %2 : vector<1x32xf32> to vector<8x32xf32>
    %5 = arith.addf %3, %4 : vector<8x32xf32>
    %6 = math.tanh %5 : vector<8x32xf32>
    %c0_5 = arith.constant 0 : index
    %c0_6 = arith.constant 0 : index
    %7 = vector.load %arg4[%c0_5, %c0_6] : memref<32x32xf32, #tpu.memory_space<vmem>>, vector<32x32xf32>
    %c0_7 = arith.constant 0 : index
    %c0_8 = arith.constant 0 : index
    %8 = vector.load %arg5[%c0_7, %c0_8] : memref<1x32xf32, #tpu.memory_space<vmem>>, vector<1x32xf32>
    %cst_9 = arith.constant dense<0.000000e+00> : vector<8x32xf32>
    %9 = tpu.matmul %6, %7, %cst_9 {dimension_numbers = #tpu.dot_dimension_numbers<[1], [0], [0], [1], [0, 0, 1, 1], [], []>} : vector<8x32xf32>, vector<32x32xf32>, vector<8x32xf32> -> vector<8x32xf32>
    %10 = vector.broadcast %8 : vector<1x32xf32> to vector<8x32xf32>
    %11 = arith.addf %9, %10 : vector<8x32xf32>
    %12 = math.tanh %11 : vector<8x32xf32>
    %c0_10 = arith.constant 0 : index
    %c0_11 = arith.constant 0 : index
    %13 = vector.load %arg6[%c0_10, %c0_11] : memref<32x2xf32, #tpu.memory_space<vmem>>, vector<32x2xf32>
    %c0_12 = arith.constant 0 : index
    %c0_13 = arith.constant 0 : index
    %14 = vector.load %arg7[%c0_12, %c0_13] : memref<1x2xf32, #tpu.memory_space<vmem>>, vector<1x2xf32>
    %cst_14 = arith.constant dense<0.000000e+00> : vector<8x2xf32>
    %15 = tpu.matmul %12, %13, %cst_14 {dimension_numbers = #tpu.dot_dimension_numbers<[1], [0], [0], [1], [0, 0, 1, 1], [], []>} : vector<8x32xf32>, vector<32x2xf32>, vector<8x2xf32> -> vector<8x2xf32>
    %16 = vector.broadcast %14 : vector<1x2xf32> to vector<8x2xf32>
    %17 = arith.addf %15, %16 : vector<8x2xf32>
    %c0_15 = arith.constant 0 : index
    %c0_16 = arith.constant 0 : index
    %18 = vector.load %arg8[%c0_15, %c0_16] : memref<8x2xf32, #tpu.memory_space<vmem>>, vector<8x2xf32>
    tpu.vector_store %arg8[%c0_15, %c0_16], %17 {strides = array<i32>} : memref<8x2xf32, #tpu.memory_space<vmem>>, vector<8x2xf32>,
    return
  }
  func.func @transform_0(%arg0: i32) -> (i32, i32) {
    %c0_i32 = arith.constant 0 : i32
    %c0_i32_0 = arith.constant 0 : i32
    return %arg0, %c0_i32 : i32, i32
  }
  func.func @transform_1(%arg0: i32) -> (i32, i32) {
    %c0_i32 = arith.constant 0 : i32
    %c0_i32_0 = arith.constant 0 : i32
    %c0_i32_1 = arith.constant 0 : i32
    return %c0_i32, %c0_i32_0 : i32, i32
  }
  func.func @transform_2(%arg0: i32) -> (i32, i32) {
    %c0_i32 = arith.constant 0 : i32
    %c0_i32_0 = arith.constant 0 : i32
    %c0_i32_1 = arith.constant 0 : i32
    return %c0_i32, %c0_i32_0 : i32, i32
  }
  func.func @transform_3(%arg0: i32) -> (i32, i32) {
    %c0_i32 = arith.constant 0 : i32
    %c0_i32_0 = arith.constant 0 : i32
    %c0_i32_1 = arith.constant 0 : i32
    return %c0_i32, %c0_i32_0 : i32, i32
  }
  func.func @transform_4(%arg0: i32) -> (i32, i32) {
    %c0_i32 = arith.constant 0 : i32
    %c0_i32_0 = arith.constant 0 : i32
    %c0_i32_1 = arith.constant 0 : i32
    return %c0_i32, %c0_i32_0 : i32, i32
  }
  func.func @transform_5(%arg0: i32) -> (i32, i32) {
    %c0_i32 = arith.constant 0 : i32
    %c0_i32_0 = arith.constant 0 : i32
    %c0_i32_1 = arith.constant 0 : i32
    return %c0_i32, %c0_i32_0 : i32, i32
  }
  func.func @transform_6(%arg0: i32) -> (i32, i32) {
    %c0_i32 = arith.constant 0 : i32
    %c0_i32_0 = arith.constant 0 : i32
    %c0_i32_1 = arith.constant 0 : i32
    return %c0_i32, %c0_i32_0 : i32, i32
  }
  func.func @transform_7(%arg0: i32) -> (i32, i32) {
    %c0_i32 = arith.constant 0 : i32
    %c0_i32_0 = arith.constant 0 : i32
    return %arg0, %c0_i32 : i32, i32
  }
}

</mosaic_0001>

<bundles_post_ra>
// kernel: mlp_forward.1
= control target key start
LH: loop header
LB: loop body
LE: loop exit
PB: predicated region body
PF: predicated region fallthrough
CT: control target
= control target key end

     0   :  { %vm39_vm0 = vcmask 1043456   ;;  %vm35_vm1 = vcmask 31744   ;;  %v342_v0 = vmov 0.0   ;;  %vm343_vm2 = vmmov 0   ;;  %s428_s1 = inlined_call_operand.vmem [shape: f32[4,32], index: 1, kind: input, shape index: {}]   ;;  %s429_s0 = inlined_call_operand.vmem [shape: f32[8,4], index: 0, kind: input, shape index: {}]   ;;  %s430_s3 = inlined_call_operand.vmem [shape: f32[32,32], index: 3, kind: input, shape index: {}]   ;;  %s431_s2 = inlined_call_operand.vmem [shape: f32[1,32], index: 2, kind: input, shape index: {}]   ;;  %s432_s5 = inlined_call_operand.vmem [shape: f32[32,2], index: 5, kind: input, shape index: {}]   ;;  %s433_s4 = inlined_call_operand.vmem [shape: f32[1,32], index: 4, kind: input, shape index: {}]   ;;  %s434_s6 = inlined_call_operand.vmem [shape: f32[1,2], index: 6, kind: input, shape index: {}]   ;;  %s435_s7 = inlined_call_operand.vmem [shape: f32[8,2], index: 7, kind: output, shape index: {}]  }
   0x1   :  { %309 = vmatprep.subr.mxu0 %v342_v0  ;;  %v27_v1 = vld [vmem:[%s428_s1] sm:$0xf]  ;;  %311 = vmatprep.mubr.msk.f32.mxu0 %vm343_vm2, %v342_v0  ;;  %v117_v3 = vld [vmem:[%s430_s3 + $0x18] sm:$0xff]  ;;  %v116_v4 = vld [vmem:[%s430_s3 + $0x10] sm:$0xff]  ;;  %vm125_vm3 = vcmask 261120   ;;  %vm284_vm4 = vcmask 15360  }
   0x2   :  { %v26_v2 = vld [vmem:[%s429_s0] sm:$0xff]  ;;  %310 = vmatpush3.msk.msra.mxu0 %vm39_vm0, %v27_v1  ;;  %314 = vmatprep.subr.mxu1 %v342_v0  ;;  %v115_v5 = vld [vmem:[%s430_s3 + $0x8] sm:$0xff]  ;;  %v203_v12 = vld [vmem:[%s432_s5 + $0x18] sm:$0xff] }
   0x3   :  { %312 = vmatmul.mubr.msk.f32.vlgmr.msra.gmra.mxu0 %vm35_vm1, %v26_v2  ;;  %322 = vmatprep.mubr.msk.f32.mxu1 %vm343_vm2, %v342_v0  ;;  %v114_v6 = vld [vmem:[%s430_s3] sm:$0xff]  ;;  %v202_v13 = vld [vmem:[%s432_s5 + $0x10] sm:$0xff]  ;;  %v201_v14 = vld [vmem:[%s432_s5 + $0x8] sm:$0xff] }
   0x4   :  { %325 = vmatprep.subr.mxu0 %v342_v0  ;;  %333 = vmatprep.mubr.msk.f32.mxu0 %vm343_vm2, %v342_v0  ;;  %v290_v7 = vld [vmem:[%s431_s2] ss:$0 sm:$0xff] }
   0x5   :  { %315 = vmatpush3.msra.mxu1 %v117_v3  ;;  %326 = vmatpush3.msra.mxu0 %v203_v12  ;;  %v200_v15 = vld [vmem:[%s432_s5] sm:$0xff] }
   0x6   :  { %316 = vmatprep.subr.mxu1 %v342_v0  ;;  %327 = vmatprep.subr.mxu0 %v342_v0  ;;  %v293_v16 = vld [vmem:[%s433_s4] ss:$0 sm:$0xff] }
   0x7   :  { %317 = vmatpush3.msra.mxu1 %v116_v4  ;;  %328 = vmatpush3.msra.mxu0 %v202_v13  ;;  %v295_v21 = vld [vmem:[%s434_s6] ss:$0 sm:$0xff] }
   0x8   :  { %318 = vmatprep.subr.mxu1 %v342_v0  ;;  %329 = vmatprep.subr.mxu0 %v342_v0 }
   0x9   :  { %319 = vmatpush3.msra.mxu1 %v115_v5  ;;  %330 = vmatpush3.msra.mxu0 %v201_v14 }
   0xa   :  { %320 = vmatprep.subr.mxu1 %v342_v0  ;;  %331 = vmatprep.subr.mxu0 %v342_v0 }
   0xb   :  { %321 = vmatpush3.msra.mxu1 %v114_v6  ;;  %332 = vmatpush3.msra.mxu0 %v200_v15 }
  0xc3   :  { %v109_v8 = vpop.f32.mrf.mxu0 }
  0xc4   :  { %v110_v9 = vadd.f32 %v290_v7, %v109_v8 }
  0xc5   :  { %v313_v10 = vpop.f32.mrf.mxu0 }
  0xc6   :  { %338 = vtanh.f32 %v110_v9 }
  0xd3   :  { %v339_v11 = vpop.eup %338 }
  0xd4   :  { %323 = vmatmul.mubr.msk.f32.vlgmr.msra.gmra.mxu1 %vm125_vm3, %v339_v11 }
 0x194   :  { %v195_v17 = vpop.f32.mrf.mxu1 }
 0x195   :  { %v196_v18 = vadd.f32 %v293_v16, %v195_v17 }
 0x196   :  { %v324_v19 = vpop.f32.mrf.mxu1 }
 0x197   :  { %340 = vtanh.f32 %v196_v18 }
 0x1a4   :  { %v341_v20 = vpop.eup %340 }
 0x1a5   :  { %334 = vmatmul.mubr.msk.f32.vlgmr.msra.gmra.mxu0 %vm125_vm3, %v341_v20 }
 0x265   :  { %v280_v22 = vpop.f32.mrf.mxu0 }
 0x266   :  { %v281_v23 = vadd.f32 %v295_v21, %v280_v22 }
 0x267   :  { %v335_v24 = vpop.f32.mrf.mxu0 }
 0x268   :  { %285 = vst.msk [vmem:[%s435_s7] sm:$0xff] %vm284_vm4, %v281_v23 }

</bundles_post_ra>
